<compile_context>
chip_gen: v5e
topology: v5e:2x2
jax: 0.10.0
libtpu: 0.0.40
codegen_flags: <defaults>
</compile_context>

<pallas_src>
import numpy as np

import jax
import jax.numpy as jnp
from jax.experimental import pallas as pl
from jax.experimental.pallas import tpu as pltpu


# ---------------------------------------------------------------------------
# Pallas kernel: modes-batched complex channel mixing on the MXU.
# ---------------------------------------------------------------------------
def _spectral_mul_kernel(xr_ref, xi_ref, wr_ref, wi_ref, or_ref, oi_ref):
    """Complex contraction 'mbi,mio->mbo' on real/imag planes.

    xr/xi : (Mt, B, Cin)    bf16 real / imag of the truncated rfft(x), mode-major
    wr/wi : (Mt, Cin, Cout) bf16 real / imag of the spectral weights
    or/oi : (Mt, B, Cout)   f32 real / imag of the mixed spectrum
    """
    xr = xr_ref[...]
    xi = xi_ref[...]
    wr = wr_ref[...]
    wi = wi_ref[...]

    # Batch over modes (axis 0), contract Cin (lhs axis 2 with rhs axis 1).
    dn = (((2,), (1,)), ((0,), (0,)))

    # Plain 4-multiply complex product; all accumulation in f32 on the MXU.
    rr = jax.lax.dot_general(xr, wr, dn, preferred_element_type=jnp.float32)
    ii = jax.lax.dot_general(xi, wi, dn, preferred_element_type=jnp.float32)
    ri = jax.lax.dot_general(xr, wi, dn, preferred_element_type=jnp.float32)
    ir = jax.lax.dot_general(xi, wr, dn, preferred_element_type=jnp.float32)

    or_ref[...] = rr - ii
    oi_ref[...] = ri + ir


# ---------------------------------------------------------------------------
# Tiling helpers.
# ---------------------------------------------------------------------------
def _padded_plane_bytes(rows, cols, dtype):
    """VMEM bytes of one (rows, cols) plane after Mosaic's native tiling:
    minor dim padded to 128 lanes, second-minor padded to 32B of sublanes
    (8 rows for f32, 16 for bf16)."""
    eb = int(np.dtype(dtype).itemsize)
    sublane = max(1, 32 // eb)
    rpad = ((rows + sublane - 1) // sublane) * sublane
    cpad = ((cols + 127) // 128) * 128
    return rpad * cpad * eb


def _vmem_budgets():
    """(vmem_limit_bytes, tile_budget_bytes), generation-aware.

    128 MiB VMEM on v5e/v6e, 64 MiB on v7x; fall back to the smallest (64 MiB)
    if the query is unavailable so the tiling is always safe.
    """
    cap = 64 * 1024 * 1024
    try:
        info = pltpu.get_tpu_info()
        cap_attr = getattr(info, "vmem_capacity_bytes", None)
        if cap_attr:
            cap = int(cap_attr)
    except Exception:
        pass
    vmem_limit = (cap * 3) // 4       # scoped limit handed to Mosaic
    tile_budget = (cap * 3) // 5      # budget for the double-buffered blocks
    return int(vmem_limit), int(tile_budget)


def _pick_m_tile(M, B, Cin, Cout, tile_budget_bytes, min_tiles=4):
    """Largest divisor of M whose double-buffered, tile-padded VMEM footprint
    fits the budget, capped so the grid has >= min_tiles steps when M allows
    (keeps both v7x TensorCores busy and the DMA pipeline running)."""
    bytes_per_mode = 2 * (
        _padded_plane_bytes(B, Cin, jnp.bfloat16)       # xr, xi blocks
        + _padded_plane_bytes(Cin, Cout, jnp.bfloat16)  # wr, wi blocks
        + _padded_plane_bytes(B, Cout, jnp.float32)     # out_r, out_i blocks
    )
    # Pallas double-buffers every input and output block.
    max_fit = max(1, tile_budget_bytes // (2 * bytes_per_mode))
    cap = min(int(max_fit), max(1, -(-M // min_tiles)))
    cap = min(cap, M)
    for t in range(cap, 0, -1):
        if M % t == 0:
            return t
    return 1


# ---------------------------------------------------------------------------
# Wrapper around pallas_call.
# ---------------------------------------------------------------------------
def prepare_spectral_weights(w_real, w_imag):
    """(Cin, Cout, M) f32 -> mode-major bf16 planes (M, Cin, Cout).

    Weights are constant parameters: call this ONCE per parameter set, outside
    the per-step forward/jit, so the transpose+cast HBM pass is not paid on
    every call.
    """
    wr_m = jnp.transpose(w_real, (2, 0, 1)).astype(jnp.bfloat16)
    wi_m = jnp.transpose(w_imag, (2, 0, 1)).astype(jnp.bfloat16)
    return wr_m, wi_m


def spectral_complex_mul(xr, xi, wr_m, wi_m, *, m_tile=None):
    """Per-mode complex channel mixing via a Pallas TPU kernel.

    xr, xi : (B, Cin, M) f32 real / imag of rfft(x)[..., :modes1]
    wr_m, wi_m : (M, Cin, Cout) bf16 mode-major weight planes
    returns (out_r, out_i), each (B, Cout, M) f32
    """
    B, Cin, M = xr.shape
    M_w, Cin_w, Cout = wr_m.shape
    assert Cin == Cin_w and M == M_w and wi_m.shape == wr_m.shape

    # Mode-major layout: modes are the grid / matmul-batch axis and Cout lands
    # on the lane (last) axis of the output.  Streamed planes are bf16.
    xr_m = jnp.transpose(xr, (2, 0, 1)).astype(jnp.bfloat16)   # (M, B, Cin)
    xi_m = jnp.transpose(xi, (2, 0, 1)).astype(jnp.bfloat16)

    vmem_limit_bytes, tile_budget = _vmem_budgets()
    if m_tile is None:
        m_tile = _pick_m_tile(M, B, Cin, Cout, tile_budget)
    assert M % m_tile == 0, "m_tile must divide modes1 (no operand padding)"
    num_tiles = M // m_tile

    # 4 real matmuls (2 flops/MAC); bf16 inputs, f32 outputs.
    flops = 8 * M * B * Cin * Cout
    bytes_accessed = 2 * (2 * M * B * Cin + 2 * M * Cin * Cout) + 4 * (2 * M * B * Cout)

    out_r, out_i = pl.pallas_call(
        _spectral_mul_kernel,
        out_shape=(
            jax.ShapeDtypeStruct((M, B, Cout), jnp.float32),
            jax.ShapeDtypeStruct((M, B, Cout), jnp.float32),
        ),
        grid=(num_tiles,),
        in_specs=[
            pl.BlockSpec((m_tile, B, Cin), lambda m: (m, 0, 0)),
            pl.BlockSpec((m_tile, B, Cin), lambda m: (m, 0, 0)),
            pl.BlockSpec((m_tile, Cin, Cout), lambda m: (m, 0, 0)),
            pl.BlockSpec((m_tile, Cin, Cout), lambda m: (m, 0, 0)),
        ],
        out_specs=(
            pl.BlockSpec((m_tile, B, Cout), lambda m: (m, 0, 0)),
            pl.BlockSpec((m_tile, B, Cout), lambda m: (m, 0, 0)),
        ),
        compiler_params=pltpu.CompilerParams(
            dimension_semantics=("parallel",),  # modes tiles are independent
            vmem_limit_bytes=vmem_limit_bytes,
        ),
        cost_estimate=pl.CostEstimate(
            flops=flops, transcendentals=0, bytes_accessed=bytes_accessed
        ),
    )(xr_m, xi_m, wr_m, wi_m)

    # Back to channels-first (B, Cout, M).
    return jnp.transpose(out_r, (1, 2, 0)), jnp.transpose(out_i, (1, 2, 0))


# ---------------------------------------------------------------------------
# Forward pass matching PyTorch SpectralConv1d.forward.
# ---------------------------------------------------------------------------
def spectral_conv1d(x, wr_m, wi_m):
    """x: (B, C_in, N) f32; wr_m/wi_m: (modes1, C_in, C_out) bf16 -> (B, C_out, N)."""
    B, Cin, N = x.shape
    modes1, _, Cout = wr_m.shape
    K = N // 2 + 1
    assert modes1 <= K

    # TODO(synk): rfft/irfft have no Pallas TPU primitive; computed with jnp.fft here.
    x_ft = jnp.fft.rfft(x.astype(jnp.float32), axis=-1)          # (B, Cin, K) c64
    xr = jnp.real(x_ft[:, :, :modes1])
    xi = jnp.imag(x_ft[:, :, :modes1])

    out_r, out_i = spectral_complex_mul(xr, xi, wr_m, wi_m)      # (B, Cout, modes1)

    mixed = jax.lax.complex(out_r, out_i)                        # (B, Cout, modes1) c64
    # Single fused pad instead of zeros + scatter.
    out_ft = jnp.pad(mixed, ((0, 0), (0, 0), (0, K - modes1)))

    return jnp.fft.irfft(out_ft, n=N, axis=-1).astype(jnp.float32)


def _reference_forward(x, w_real, w_imag, modes1):
    """Pure-JAX reference mirroring the PyTorch module."""
    B, Cin, N = x.shape
    Cout = w_real.shape[1]
    K = N // 2 + 1
    w = (w_real + 1j * w_imag).astype(jnp.complex64)
    x_ft = jnp.fft.rfft(x, axis=-1)
    mixed = jnp.einsum("bix,iox->box", x_ft[:, :, :modes1], w)
    out_ft = jnp.zeros((B, Cout, K), dtype=jnp.complex64)
    out_ft = out_ft.at[:, :, :modes1].set(mixed)
    return jnp.fft.irfft(out_ft, n=N, axis=-1)


if __name__ == "__main__":
    # Small shapes consistent with the module: batch=2, in_channels=4,
    # out_channels=4, spatial N=16, modes1=8 (<= N//2 + 1 = 9).
    B, Cin, Cout, N, modes1 = 2, 4, 4, 16, 8

    key = jax.random.PRNGKey(0)
    kx, kwr, kwi = jax.random.split(key, 3)

    x = jax.random.normal(kx, (B, Cin, N), dtype=jnp.float32)

    # Deterministic weight init mirroring:
    #   scale * torch.rand(in, out, modes, dtype=cfloat)
    scale = 1.0 / (Cin * Cout)
    w_real = scale * jax.random.uniform(kwr, (Cin, Cout, modes1), dtype=jnp.float32)
    w_imag = scale * jax.random.uniform(kwi, (Cin, Cout, modes1), dtype=jnp.float32)

    # Weight prep runs once, outside the per-step forward (weights are params).
    wr_m, wi_m = prepare_spectral_weights(w_real, w_imag)

    fwd = jax.jit(spectral_conv1d)
    y = jax.block_until_ready(fwd(x, wr_m, wi_m))

    y_ref = _reference_forward(x, w_real, w_imag, modes1)
    assert y.shape == (B, Cout, N)
    # Normalized max-error check: tolerant of bf16 operand quantization and
    # MXU rounding modes, while any layout/transpose/math bug shows up as O(1).
    rel_err = float(jnp.max(jnp.abs(y - y_ref)) / (jnp.max(jnp.abs(y_ref)) + 1e-12))
    assert rel_err < 2e-2, f"mismatch vs reference: rel_err={rel_err}"

    print("KERNEL_OK")
</pallas_src>

<mosaic_0001>
module attributes {stable_mosaic.version = 11 : i64} {
  func.func @_spectral_mul_kernel(%arg0: i32, %arg1: memref<2x2x4xbf16, #tpu.memory_space<vmem>>, %arg2: memref<2x2x4xbf16, #tpu.memory_space<vmem>>, %arg3: memref<2x4x4xbf16, #tpu.memory_space<vmem>>, %arg4: memref<2x4x4xbf16, #tpu.memory_space<vmem>>, %arg5: memref<2x2x4xf32, #tpu.memory_space<vmem>>, %arg6: memref<2x2x4xf32, #tpu.memory_space<vmem>>) attributes {dimension_semantics = [#tpu.dimension_semantics<parallel>], iteration_bounds = array<i64: 4>, scalar_prefetch = 0 : i64, scratch_operands = 0 : i64, tpu.core_type = #tpu.core_type<tc>, window_params = [{transform_indices = @transform_0, window_bounds = array<i64: 2, 2, 4>}, {transform_indices = @transform_1, window_bounds = array<i64: 2, 2, 4>}, {transform_indices = @transform_2, window_bounds = array<i64: 2, 4, 4>}, {transform_indices = @transform_3, window_bounds = array<i64: 2, 4, 4>}, {transform_indices = @transform_4, window_bounds = array<i64: 2, 2, 4>}, {transform_indices = @transform_5, window_bounds = array<i64: 2, 2, 4>}]} {
    %c0 = arith.constant 0 : index
    %c0_0 = arith.constant 0 : index
    %c0_1 = arith.constant 0 : index
    %0 = vector.load %arg1[%c0, %c0_0, %c0_1] : memref<2x2x4xbf16, #tpu.memory_space<vmem>>, vector<2x2x4xbf16>
    %c0_2 = arith.constant 0 : index
    %c0_3 = arith.constant 0 : index
    %c0_4 = arith.constant 0 : index
    %1 = vector.load %arg2[%c0_2, %c0_3, %c0_4] : memref<2x2x4xbf16, #tpu.memory_space<vmem>>, vector<2x2x4xbf16>
    %c0_5 = arith.constant 0 : index
    %c0_6 = arith.constant 0 : index
    %c0_7 = arith.constant 0 : index
    %2 = vector.load %arg3[%c0_5, %c0_6, %c0_7] : memref<2x4x4xbf16, #tpu.memory_space<vmem>>, vector<2x4x4xbf16>
    %c0_8 = arith.constant 0 : index
    %c0_9 = arith.constant 0 : index
    %c0_10 = arith.constant 0 : index
    %3 = vector.load %arg4[%c0_8, %c0_9, %c0_10] : memref<2x4x4xbf16, #tpu.memory_space<vmem>>, vector<2x4x4xbf16>
    %cst = arith.constant dense<0.000000e+00> : vector<2x2x4xf32>
    %4 = tpu.matmul %0, %2, %cst {dimension_numbers = #tpu.dot_dimension_numbers<[2], [1], [1], [2], [0, 0, 0, 1, 1, 2], [0], [0]>} : vector<2x2x4xbf16>, vector<2x4x4xbf16>, vector<2x2x4xf32> -> vector<2x2x4xf32>
    %cst_11 = arith.constant dense<0.000000e+00> : vector<2x2x4xf32>
    %5 = tpu.matmul %1, %3, %cst_11 {dimension_numbers = #tpu.dot_dimension_numbers<[2], [1], [1], [2], [0, 0, 0, 1, 1, 2], [0], [0]>} : vector<2x2x4xbf16>, vector<2x4x4xbf16>, vector<2x2x4xf32> -> vector<2x2x4xf32>
    %cst_12 = arith.constant dense<0.000000e+00> : vector<2x2x4xf32>
    %6 = tpu.matmul %0, %3, %cst_12 {dimension_numbers = #tpu.dot_dimension_numbers<[2], [1], [1], [2], [0, 0, 0, 1, 1, 2], [0], [0]>} : vector<2x2x4xbf16>, vector<2x4x4xbf16>, vector<2x2x4xf32> -> vector<2x2x4xf32>
    %cst_13 = arith.constant dense<0.000000e+00> : vector<2x2x4xf32>
    %7 = tpu.matmul %1, %2, %cst_13 {dimension_numbers = #tpu.dot_dimension_numbers<[2], [1], [1], [2], [0, 0, 0, 1, 1, 2], [0], [0]>} : vector<2x2x4xbf16>, vector<2x4x4xbf16>, vector<2x2x4xf32> -> vector<2x2x4xf32>
    %8 = arith.subf %4, %5 : vector<2x2x4xf32>
    %c0_14 = arith.constant 0 : index
    %c0_15 = arith.constant 0 : index
    %c0_16 = arith.constant 0 : index
    %9 = vector.load %arg5[%c0_14, %c0_15, %c0_16] : memref<2x2x4xf32, #tpu.memory_space<vmem>>, vector<2x2x4xf32>
    tpu.vector_store %arg5[%c0_14, %c0_15, %c0_16], %8 {strides = array<i32>} : memref<2x2x4xf32, #tpu.memory_space<vmem>>, vector<2x2x4xf32>,
    %10 = arith.addf %6, %7 : vector<2x2x4xf32>
    %c0_17 = arith.constant 0 : index
    %c0_18 = arith.constant 0 : index
    %c0_19 = arith.constant 0 : index
    %11 = vector.load %arg6[%c0_17, %c0_18, %c0_19] : memref<2x2x4xf32, #tpu.memory_space<vmem>>, vector<2x2x4xf32>
    tpu.vector_store %arg6[%c0_17, %c0_18, %c0_19], %10 {strides = array<i32>} : memref<2x2x4xf32, #tpu.memory_space<vmem>>, vector<2x2x4xf32>,
    return
  }
  func.func @transform_0(%arg0: i32) -> (i32, i32, i32) {
    %c0_i32 = arith.constant 0 : i32
    %c0_i32_0 = arith.constant 0 : i32
    %c0_i32_1 = arith.constant 0 : i32
    return %arg0, %c0_i32, %c0_i32_0 : i32, i32, i32
  }
  func.func @transform_1(%arg0: i32) -> (i32, i32, i32) {
    %c0_i32 = arith.constant 0 : i32
    %c0_i32_0 = arith.constant 0 : i32
    %c0_i32_1 = arith.constant 0 : i32
    return %arg0, %c0_i32, %c0_i32_0 : i32, i32, i32
  }
  func.func @transform_2(%arg0: i32) -> (i32, i32, i32) {
    %c0_i32 = arith.constant 0 : i32
    %c0_i32_0 = arith.constant 0 : i32
    %c0_i32_1 = arith.constant 0 : i32
    return %arg0, %c0_i32, %c0_i32_0 : i32, i32, i32
  }
  func.func @transform_3(%arg0: i32) -> (i32, i32, i32) {
    %c0_i32 = arith.constant 0 : i32
    %c0_i32_0 = arith.constant 0 : i32
    %c0_i32_1 = arith.constant 0 : i32
    return %arg0, %c0_i32, %c0_i32_0 : i32, i32, i32
  }
  func.func @transform_4(%arg0: i32) -> (i32, i32, i32) {
    %c0_i32 = arith.constant 0 : i32
    %c0_i32_0 = arith.constant 0 : i32
    %c0_i32_1 = arith.constant 0 : i32
    return %arg0, %c0_i32, %c0_i32_0 : i32, i32, i32
  }
  func.func @transform_5(%arg0: i32) -> (i32, i32, i32) {
    %c0_i32 = arith.constant 0 : i32
    %c0_i32_0 = arith.constant 0 : i32
    %c0_i32_1 = arith.constant 0 : i32
    return %arg0, %c0_i32, %c0_i32_0 : i32, i32, i32
  }
}

</mosaic_0001>

<bundles_post_ra>
// kernel: reverse.1
= control target key start
LH: loop header
LB: loop body
LE: loop exit
PB: predicated region body
PF: predicated region fallthrough
CT: control target
= control target key end

     0   :  { %s92_s0 = inlined_call_operand.vmem [shape: f32[2,4,7], index: 0, kind: input, shape index: {}]   ;;  %s93_s1 = inlined_call_operand.vmem [shape: f32[2,4,7], index: 1, kind: output, shape index: {}]  }
   0x1   :  { %v28_v0 = vld [vmem:[%s92_s0 + $0xc] sm:$0x3]  ;;  %v29_v1 = vld [vmem:[%s92_s0 + $0xa] sm:$0x3]  ;;  %v31_v2 = vld [vmem:[%s92_s0 + $0x8] sm:$0x3] }
   0x2   :  { %4 = vst [vmem:[%s93_s1] sm:$0x3] %v28_v0  ;;  %v33_v3 = vld [vmem:[%s92_s0 + $0x6] sm:$0x3]  ;;  %v35_v4 = vld [vmem:[%s92_s0 + $0x4] sm:$0x3] }
   0x3   :  { %30 = vst [vmem:[%s93_s1 + $0x2] sm:$0x3] %v29_v1  ;;  %v37_v5 = vld [vmem:[%s92_s0 + $0x2] sm:$0x3]  ;;  %v25_v6 = vld [vmem:[%s92_s0] sm:$0x3] }
   0x4   :  { %32 = vst [vmem:[%s93_s1 + $0x4] sm:$0x3] %v31_v2 }
   0x5   :  { %34 = vst [vmem:[%s93_s1 + $0x6] sm:$0x3] %v33_v3 }
   0x6   :  { %36 = vst [vmem:[%s93_s1 + $0x8] sm:$0x3] %v35_v4 }
   0x7   :  { %38 = vst [vmem:[%s93_s1 + $0xa] sm:$0x3] %v37_v5 }
   0x8   :  { %39 = vst [vmem:[%s93_s1 + $0xc] sm:$0x3] %v25_v6 }

// kernel: spectral_conv1d.1
= control target key start
LH: loop header
LB: loop body
LE: loop exit
PB: predicated region body
PF: predicated region fallthrough
CT: control target
= control target key end

     0   :  { %s639_s18 = smov 0   ;;  %s686_s0 = inlined_call_operand.vmem [shape: bf16[8,2,4], index: 0, kind: input, shape index: {}]   ;;  %s687_s1 = inlined_call_operand.vmem [shape: bf16[8,2,4], index: 1, kind: input, shape index: {}]   ;;  %s688_s2 = inlined_call_operand.vmem [shape: bf16[8,4,4], index: 2, kind: input, shape index: {}]   ;;  %s689_s3 = inlined_call_operand.vmem [shape: bf16[8,4,4], index: 3, kind: input, shape index: {}]   ;;  %s690_s4 = inlined_call_operand.vmem [shape: f32[8,2,4], index: 4, kind: output, shape index: {0}]   ;;  %s691_s5 = inlined_call_operand.vmem [shape: f32[8,2,4], index: 5, kind: output, shape index: {1}]  }
   0x1 LB: > { %s568_s19 = sadd.s32 4294967295, %s607_s18   ;;  %p572_p0 = scmp.ge.s32.totalorder %s607_s18, 1  ;;  %s607_s18 = sphi %s639_s18, %s16_s18  }
   0x2   : > { %p222_p1 = scmp.lt.s32.totalorder %s607_s18, 5 }
   0x4   : > { %p223_p2 = pnand %p572_p0, %p222_p1 }
   0x5   : > { %s573_s20 = sshll.u32 (!%p223_p2), %s568_s19, 1 }
   0x6   : > { %226 = sbr.rel (%p223_p2) target bundleno = 176 (0xb0), region = 36  ;;  %p269_p3 = scmp.lt.s32.totalorder (!%p223_p2), %s573_s20, 7 }
   0xb   : > { %s693_s20 = smov (!%p269_p3, %s573_s20), 7  ;;  %vm315_vm0 = vcmask 1041408   ;;  %vm311_vm1 = vcmask 31744   ;;  %vm417_vm2 = vcmask 25600  }
   0xc   : > { %s647_s21 = sshll.u32 %s693_s20, 1  ;;  %s271_s24 = scalar_lea.vmem %s686_s0, %s693_s20 }
   0xd   : > { %s282_s27 = scalar_lea.vmem %s688_s2, %s647_s21  ;;  %s288_s30 = scalar_lea.vmem %s689_s3, %s647_s21  ;;  %v303_v8 = vld [vmem:[%s271_s24] sm:$0x1]  ;;  %v304_v9 = vld [vmem:[%s271_s24 + $0x1] sm:$0x1] }
   0xe   : > { %v307_v0 = vld [vmem:[%s282_s27] sm:$0x3]  ;;  %v308_v1 = vld [vmem:[%s282_s27 + $0x2] sm:$0x3]  ;;  %s276_s8 = scalar_lea.vmem %s687_s1, %s693_s20  ;;  %s294_s11 = scalar_lea.vmem %s690_s4, %s647_s21 }
   0xf   : > { %v309_v2 = vld [vmem:[%s288_s30] sm:$0x3]  ;;  %v317_v3 = vsel %vm315_vm0, %v307_v0, 0  ;;  %v336_v4 = vsel %vm315_vm0, %v308_v1, 0  ;;  %v310_v6 = vld [vmem:[%s288_s30 + $0x2] sm:$0x3]  ;;  %s300_s14 = scalar_lea.vmem %s691_s5, %s647_s21 }
  0x10   : > { %v355_v5 = vsel %vm315_vm0, %v309_v2, 0  ;;  %326 = vmatpush.bf16.msra.mxu0 %v317_v3  ;;  %345 = vmatpush.bf16.msra.mxu1 %v336_v4  ;;  %v374_v7 = vsel %vm315_vm0, %v310_v6, 0  ;;  %v305_v10 = vld [vmem:[%s276_s8] sm:$0x1]  ;;  %v306_v11 = vld [vmem:[%s276_s8 + $0x1] sm:$0x1] }
  0x11   : > { %364 = vmatpush.bf16.msra.mxu2 %v355_v5  ;;  %383 = vmatpush.bf16.msra.mxu3 %v374_v7 }
  0x13   : > { %583 = vmatmul.msk.bf16.vlgmr.msra.gmra.mxu0 %vm311_vm1, %v303_v8  ;;  %584 = vmatmul.msk.bf16.vlgmr.msra.gmra.mxu1 %vm311_vm1, %v304_v9 }
  0x14   : > { %585 = vmatmul.msk.bf16.vlgmr.msra.gmra.mxu2 %vm311_vm1, %v305_v10  ;;  %586 = vmatmul.msk.bf16.vlgmr.msra.gmra.mxu3 %vm311_vm1, %v306_v11 }
  0x15   : > { %427 = vmatpush.bf16.msrb.mxu2 %v355_v5  ;;  %440 = vmatpush.bf16.msrb.mxu3 %v374_v7 }
  0x16   : > { %396 = vmatpush.bf16.msrb.mxu0 %v317_v3  ;;  %409 = vmatpush.bf16.msrb.mxu1 %v336_v4 }
  0x23   : > { %587 = vmatmul.msk.bf16.vlgmr.msrb.gmra.mxu0 %vm311_vm1, %v305_v10  ;;  %588 = vmatmul.msk.bf16.vlgmr.msrb.gmra.mxu1 %vm311_vm1, %v306_v11 }
  0x24   : > { %589 = vmatmul.msk.bf16.vlgmr.msrb.gmra.mxu2 %vm311_vm1, %v303_v8  ;;  %590 = vmatmul.msk.bf16.vlgmr.msrb.gmra.mxu3 %vm311_vm1, %v304_v9 }
  0x90   : > { %v328_v12 = vpop.f32.mrf.mxu0  ;;  %v347_v13 = vpop.f32.mrf.mxu1 }
  0x97   : > { %v366_v14 = vpop.f32.mrf.mxu2  ;;  %v385_v15 = vpop.f32.mrf.mxu3 }
  0x98   : > { %v415_v16 = vsub.f32 %v328_v12, %v366_v14  ;;  %v416_v17 = vsub.f32 %v347_v13, %v385_v15  ;;  %v330_v18 = vpop.f32.mrf.mxu0  ;;  %v349_v19 = vpop.f32.mrf.mxu1 }
  0x9a   : > { %418 = vst.msk [vmem:[%s294_s11] sm:$0x3] %vm417_vm2, %v415_v16 }
  0x9b   : > { %419 = vst.msk [vmem:[%s294_s11 + $0x2] sm:$0x3] %vm417_vm2, %v416_v17 }
  0x9f   : > { %v368_v20 = vpop.f32.mrf.mxu2  ;;  %v387_v21 = vpop.f32.mrf.mxu3 }
  0xa0   : > { %v398_v22 = vpop.f32.mrf.mxu0  ;;  %v411_v23 = vpop.f32.mrf.mxu1 }
  0xa7   : > { %v429_v24 = vpop.f32.mrf.mxu2  ;;  %v442_v25 = vpop.f32.mrf.mxu3 }
  0xa8   : > { %v430_v26 = vadd.f32 %v429_v24, %v398_v22  ;;  %v443_v27 = vadd.f32 %v442_v25, %v411_v23  ;;  %v400_v28 = vpop.f32.mrf.mxu0  ;;  %v413_v29 = vpop.f32.mrf.mxu1 }
  0xaa   : > { %446 = vst.msk [vmem:[%s300_s14] sm:$0x3] %vm417_vm2, %v430_v26 }
  0xab   : > { %447 = vst.msk [vmem:[%s300_s14 + $0x2] sm:$0x3] %vm417_vm2, %v443_v27 }
  0xaf   : > { %v431_v30 = vpop.f32.mrf.mxu2  ;;  %v444_v31 = vpop.f32.mrf.mxu3 }
  0xb0 PF: > { %s16_s18 = sadd.s32 1, %s607_s18  }
  0xb1   : > { %p13_p4 = scmp.ge.s32.totalorder %s16_s18, 6  }
  0xb3   :  { %15 = sbr.rel (!%p13_p4) target bundleno = 1 (0x1), region = 87 }

</bundles_post_ra>
